<compile_context>
chip_gen: v6e
topology: v6e:2x2x1
jax: 0.10.0
libtpu: 0.0.40
codegen_flags: <defaults>
</compile_context>

<pallas_src>
import functools
from typing import NamedTuple

import jax
import jax.numpy as jnp
from jax.experimental import pallas as pl
from jax.experimental.pallas import tpu as pltpu

LANE = 128
SUBLANE = 8


def _round_up(x, m):
    return (x + m - 1) // m * m


def _cdiv(a, b):
    return -(-a // b)


class Layout(NamedTuple):
    n_feature: int
    f_pad: int
    n_hidden1: int
    n_hidden2: int
    n_output: int
    n_class_rows: int
    hidden_cols: int  # H: padded unit count (multiple of 128)


def mlp_kernel(x_ref, w1_ref, w23_ref, b_ref, o_ref, *, n_output, hidden_cols):
    """Feature-major MLP block: activations are (units, batch), batch on lanes."""
    H = hidden_cols
    xt = x_ref[...]                                                     # (f_pad, TB)

    # Layer 1: (H, f_pad) @ (f_pad, TB) -> (H, TB); padded rows/cols are zero.
    h1 = jnp.dot(w1_ref[...], xt, preferred_element_type=jnp.float32) + b_ref[:, 0:1]
    h1 = jnp.maximum(h1, 0.0)

    # Layer 2: full 128-aligned column band of the packed slab -> clean view slice.
    h2 = jnp.dot(w23_ref[:, 0:H], h1, preferred_element_type=jnp.float32) + b_ref[:, 1:2]
    h2 = jnp.maximum(h2, 0.0)

    # Layer 3 (logits), classes on sublanes.
    logits = (jnp.dot(w23_ref[:, H:2 * H], h2, preferred_element_type=jnp.float32)
              + b_ref[:, 2:3])                                          # (H, TB)

    # Numerically-stable softmax over the class axis (PyTorch dim=1).
    # Padded class rows have logit 0 (zero weights / zero bias); they are masked to
    # exactly 0 after the exp, and normalization uses an exact divide so every real
    # row sums to 1 to f32 precision.
    m = jnp.max(logits, axis=0, keepdims=True)
    e = jnp.exp(logits - m)
    rows = jax.lax.broadcasted_iota(jnp.int32, e.shape, 0)
    e = jnp.where(rows < n_output, e, 0.0)
    s = jnp.sum(e, axis=0, keepdims=True)
    probs = e / s
    o_ref[...] = probs[:o_ref.shape[0], :]                              # (n_class_rows, TB)


def pack_params(w1, b1, w2, b2, w3, b3):
    """Pack PyTorch-layout params (W: (out,in), b: (out,)) into lane-aligned slabs.

    Call once at parameter-creation time (not per forward call).
    """
    n_h1, n_feat = w1.shape
    n_h2, _ = w2.shape
    n_out, _ = w3.shape
    H = _round_up(max(n_h1, n_h2, n_out), LANE)
    f_pad = _round_up(n_feat, SUBLANE)

    w1_slab = jnp.zeros((H, f_pad), jnp.float32).at[:n_h1, :n_feat].set(
        w1.astype(jnp.float32))
    w23_slab = jnp.zeros((H, 2 * H), jnp.float32)
    w23_slab = w23_slab.at[:n_h2, :n_h1].set(w2.astype(jnp.float32))
    w23_slab = w23_slab.at[:n_out, H:H + n_h2].set(w3.astype(jnp.float32))

    b_slab = jnp.zeros((H, 4), jnp.float32)
    b_slab = b_slab.at[:n_h1, 0].set(b1.astype(jnp.float32))
    b_slab = b_slab.at[:n_h2, 1].set(b2.astype(jnp.float32))
    b_slab = b_slab.at[:n_out, 2].set(b3.astype(jnp.float32))

    layout = Layout(n_feature=n_feat, f_pad=f_pad, n_hidden1=n_h1, n_hidden2=n_h2,
                    n_output=n_out, n_class_rows=_round_up(n_out, SUBLANE),
                    hidden_cols=H)
    return (w1_slab, w23_slab, b_slab), layout


def _choose_tile(batch, block_batch, min_tiles=2):
    """Pick a batch tile that minimizes padding and feeds >=2 TCs when batch allows."""
    n_tiles = max(_cdiv(batch, block_batch), 1)
    if n_tiles < min_tiles and batch >= 2 * LANE:
        n_tiles = min(min_tiles, _cdiv(batch, LANE))
    if n_tiles <= 1:
        tb = _round_up(batch, SUBLANE)          # single tile: lane dim == full array
    else:
        tb = _round_up(_cdiv(batch, n_tiles), LANE)   # multi-tile: lane dim % 128 == 0
    padded_batch = _round_up(batch, tb)
    return tb, padded_batch


@functools.partial(jax.jit, static_argnames=("layout", "block_batch"))
def net_forward(x, w1_slab, w23_slab, b_slab, *, layout, block_batch=4096):
    batch = x.shape[0]
    tb, padded_batch = _choose_tile(batch, block_batch)
    grid = (padded_batch // tb,)
    H = layout.hidden_cols

    # Feature-major input: batch on lanes, zero-padded feature rows / batch columns.
    xt = jnp.zeros((layout.f_pad, padded_batch), jnp.float32)
    xt = xt.at[:layout.n_feature, :batch].set(x.T.astype(jnp.float32))

    flops = 2 * padded_batch * (layout.f_pad * H + 2 * H * H)
    bytes_accessed = 4 * (xt.size + w1_slab.size + w23_slab.size + b_slab.size
                          + layout.n_class_rows * padded_batch)
    cost = pl.CostEstimate(flops=flops, transcendentals=padded_batch * H,
                           bytes_accessed=bytes_accessed)

    kernel = functools.partial(mlp_kernel, n_output=layout.n_output, hidden_cols=H)

    out_t = pl.pallas_call(
        kernel,
        out_shape=jax.ShapeDtypeStruct((layout.n_class_rows, padded_batch), jnp.float32),
        grid_spec=pltpu.PrefetchScalarGridSpec(
            num_scalar_prefetch=0,
            grid=grid,
            in_specs=[
                pl.BlockSpec((layout.f_pad, tb), lambda i: (0, i)),   # x^T: tiled on batch
                pl.BlockSpec(w1_slab.shape, lambda i: (0, 0)),        # weights: VMEM-resident
                pl.BlockSpec(w23_slab.shape, lambda i: (0, 0)),
                pl.BlockSpec(b_slab.shape, lambda i: (0, 0)),         # biases: VMEM-resident
            ],
            out_specs=pl.BlockSpec((layout.n_class_rows, tb), lambda i: (0, i)),
        ),
        compiler_params=pltpu.CompilerParams(dimension_semantics=("parallel",)),
        cost_estimate=cost,
    )(xt, w1_slab, w23_slab, b_slab)

    # Tiny class-major -> (batch, n_output) transpose/slice; fused inside this jit.
    return out_t[:layout.n_output, :batch].T


def init_linear(key, fan_in, fan_out):
    # PyTorch nn.Linear default init: U(-1/sqrt(fan_in), 1/sqrt(fan_in)); layout (out, in).
    kw, kb = jax.random.split(key)
    bound = 1.0 / jnp.sqrt(jnp.float32(fan_in))
    w = jax.random.uniform(kw, (fan_out, fan_in), jnp.float32, -bound, bound)
    b = jax.random.uniform(kb, (fan_out,), jnp.float32, -bound, bound)
    return w, b


def reference_forward(x, w1, b1, w2, b2, w3, b3):
    h1 = jnp.maximum(x @ w1.T + b1, 0.0)
    h2 = jnp.maximum(h1 @ w2.T + b2, 0.0)
    return jax.nn.softmax(h2 @ w3.T + b3, axis=1)


if __name__ == "__main__":
    # Iris-like sizes: 4 features, 3 classes, small hidden layers, batch = 8.
    n_feature, n_hidden1, n_hidden2, n_output = 4, 32, 16, 3
    batch = 8

    key = jax.random.PRNGKey(0)
    kx, k1, k2, k3 = jax.random.split(key, 4)

    x = jax.random.normal(kx, (batch, n_feature), jnp.float32)
    w1, b1 = init_linear(k1, n_feature, n_hidden1)
    w2, b2 = init_linear(k2, n_hidden1, n_hidden2)
    w3, b3 = init_linear(k3, n_hidden2, n_output)

    # Pack once (outside the per-call path), then run the jitted forward.
    (w1_slab, w23_slab, b_slab), layout = pack_params(w1, b1, w2, b2, w3, b3)

    out = net_forward(x, w1_slab, w23_slab, b_slab, layout=layout)
    out = jax.block_until_ready(out)

    ref = reference_forward(x, w1, b1, w2, b2, w3, b3)
    assert out.shape == (batch, n_output)
    assert jnp.allclose(out, ref, atol=1e-4, rtol=1e-4)
    assert jnp.allclose(jnp.sum(out, axis=1), 1.0, atol=1e-4)

    print("KERNEL_OK")
</pallas_src>

<mosaic_0001>
module attributes {stable_mosaic.version = 11 : i64} {
  func.func @mlp_kernel(%arg0: i32, %arg1: memref<8x8xf32, #tpu.memory_space<vmem>>, %arg2: memref<128x8xf32, #tpu.memory_space<vmem>>, %arg3: memref<128x256xf32, #tpu.memory_space<vmem>>, %arg4: memref<128x4xf32, #tpu.memory_space<vmem>>, %arg5: memref<8x8xf32, #tpu.memory_space<vmem>>) attributes {dimension_semantics = [#tpu.dimension_semantics<parallel>], iteration_bounds = array<i64: 1>, scalar_prefetch = 0 : i64, scratch_operands = 0 : i64, tpu.core_type = #tpu.core_type<tc>, window_params = [{transform_indices = @transform_0, window_bounds = array<i64: 8, 8>}, {pipeline_mode = #tpu.pipeline_mode<synchronous>, transform_indices = @transform_1, window_bounds = array<i64: 128, 8>}, {pipeline_mode = #tpu.pipeline_mode<synchronous>, transform_indices = @transform_2, window_bounds = array<i64: 128, 256>}, {pipeline_mode = #tpu.pipeline_mode<synchronous>, transform_indices = @transform_3, window_bounds = array<i64: 128, 4>}, {transform_indices = @transform_4, window_bounds = array<i64: 8, 8>}]} {
    %c0 = arith.constant 0 : index
    %c0_0 = arith.constant 0 : index
    %0 = vector.load %arg1[%c0, %c0_0] : memref<8x8xf32, #tpu.memory_space<vmem>>, vector<8x8xf32>
    %c0_1 = arith.constant 0 : index
    %c0_2 = arith.constant 0 : index
    %1 = vector.load %arg2[%c0_1, %c0_2] : memref<128x8xf32, #tpu.memory_space<vmem>>, vector<128x8xf32>
    %cst = arith.constant dense<0.000000e+00> : vector<128x8xf32>
    %2 = tpu.matmul %1, %0, %cst {dimension_numbers = #tpu.dot_dimension_numbers<[1], [0], [0], [1], [0, 0, 1, 1], [], []>} : vector<128x8xf32>, vector<8x8xf32>, vector<128x8xf32> -> vector<128x8xf32>
    %c0_3 = arith.constant 0 : index
    %c0_4 = arith.constant 0 : index
    %3 = vector.load %arg4[%c0_3, %c0_4] : memref<128x4xf32, #tpu.memory_space<vmem>>, vector<128x1xf32>
    %4 = vector.broadcast %3 : vector<128x1xf32> to vector<128x8xf32>
    %5 = arith.addf %2, %4 : vector<128x8xf32>
    %cst_5 = arith.constant 0.000000e+00 : f32
    %6 = vector.broadcast %cst_5 : f32 to vector<128x8xf32>
    %7 = arith.maximumf %5, %6 : vector<128x8xf32>
    %c0_6 = arith.constant 0 : index
    %c0_7 = arith.constant 0 : index
    %8 = vector.load %arg3[%c0_6, %c0_7] : memref<128x256xf32, #tpu.memory_space<vmem>>, vector<128x128xf32>
    %cst_8 = arith.constant dense<0.000000e+00> : vector<128x8xf32>
    %9 = tpu.matmul %8, %7, %cst_8 {dimension_numbers = #tpu.dot_dimension_numbers<[1], [0], [0], [1], [0, 0, 1, 1], [], []>} : vector<128x128xf32>, vector<128x8xf32>, vector<128x8xf32> -> vector<128x8xf32>
    %c0_9 = arith.constant 0 : index
    %c1 = arith.constant 1 : index
    %10 = vector.load %arg4[%c0_9, %c1] : memref<128x4xf32, #tpu.memory_space<vmem>>, vector<128x1xf32>
    %11 = vector.broadcast %10 : vector<128x1xf32> to vector<128x8xf32>
    %12 = arith.addf %9, %11 : vector<128x8xf32>
    %cst_10 = arith.constant 0.000000e+00 : f32
    %13 = vector.broadcast %cst_10 : f32 to vector<128x8xf32>
    %14 = arith.maximumf %12, %13 : vector<128x8xf32>
    %c0_11 = arith.constant 0 : index
    %c128 = arith.constant 128 : index
    %15 = vector.load %arg3[%c0_11, %c128] : memref<128x256xf32, #tpu.memory_space<vmem>>, vector<128x128xf32>
    %cst_12 = arith.constant dense<0.000000e+00> : vector<128x8xf32>
    %16 = tpu.matmul %15, %14, %cst_12 {dimension_numbers = #tpu.dot_dimension_numbers<[1], [0], [0], [1], [0, 0, 1, 1], [], []>} : vector<128x128xf32>, vector<128x8xf32>, vector<128x8xf32> -> vector<128x8xf32>
    %c0_13 = arith.constant 0 : index
    %c2 = arith.constant 2 : index
    %17 = vector.load %arg4[%c0_13, %c2] : memref<128x4xf32, #tpu.memory_space<vmem>>, vector<128x1xf32>
    %18 = vector.broadcast %17 : vector<128x1xf32> to vector<128x8xf32>
    %19 = arith.addf %16, %18 : vector<128x8xf32>
    %cst_14 = arith.constant dense<0xFF800000> : vector<8xf32>
    %20 = vector.multi_reduction <maximumf>, %19, %cst_14 [0] : vector<128x8xf32> to vector<8xf32>
    %21 = vector.shape_cast %20 : vector<8xf32> to vector<1x8xf32>
    %22 = vector.broadcast %21 : vector<1x8xf32> to vector<128x8xf32>
    %23 = arith.subf %19, %22 : vector<128x8xf32>
    %24 = math.exp %23 : vector<128x8xf32>
    %25 = tpu.iota {dimensions = array<i32: 0>} : vector<128x8xi32>
    %c3_i32 = arith.constant 3 : i32
    %26 = vector.broadcast %c3_i32 : i32 to vector<128x8xi32>
    %27 = arith.cmpi slt, %25, %26 : vector<128x8xi32>
    %cst_15 = arith.constant 0.000000e+00 : f32
    %28 = vector.broadcast %cst_15 : f32 to vector<128x8xf32>
    %29 = arith.select %27, %24, %28 : vector<128x8xi1>, vector<128x8xf32>
    %cst_16 = arith.constant dense<0.000000e+00> : vector<8xf32>
    %30 = vector.multi_reduction <add>, %29, %cst_16 [0] : vector<128x8xf32> to vector<8xf32>
    %31 = vector.shape_cast %30 : vector<8xf32> to vector<1x8xf32>
    %32 = vector.broadcast %31 : vector<1x8xf32> to vector<128x8xf32>
    %33 = arith.divf %29, %32 : vector<128x8xf32>
    %34 = vector.extract_strided_slice %33 {offsets = [0, 0], sizes = [8, 8], strides = [1, 1]} : vector<128x8xf32> to vector<8x8xf32>
    %c0_17 = arith.constant 0 : index
    %c0_18 = arith.constant 0 : index
    %35 = vector.load %arg5[%c0_17, %c0_18] : memref<8x8xf32, #tpu.memory_space<vmem>>, vector<8x8xf32>
    tpu.vector_store %arg5[%c0_17, %c0_18], %34 {strides = array<i32>} : memref<8x8xf32, #tpu.memory_space<vmem>>, vector<8x8xf32>,
    return
  }
  func.func @transform_0(%arg0: i32) -> (i32, i32) {
    %c0_i32 = arith.constant 0 : i32
    %c0_i32_0 = arith.constant 0 : i32
    return %c0_i32, %arg0 : i32, i32
  }
  func.func @transform_1(%arg0: i32) -> (i32, i32) {
    %c0_i32 = arith.constant 0 : i32
    %c0_i32_0 = arith.constant 0 : i32
    %c0_i32_1 = arith.constant 0 : i32
    return %c0_i32, %c0_i32_0 : i32, i32
  }
  func.func @transform_2(%arg0: i32) -> (i32, i32) {
    %c0_i32 = arith.constant 0 : i32
    %c0_i32_0 = arith.constant 0 : i32
    %c0_i32_1 = arith.constant 0 : i32
    return %c0_i32, %c0_i32_0 : i32, i32
  }
  func.func @transform_3(%arg0: i32) -> (i32, i32) {
    %c0_i32 = arith.constant 0 : i32
    %c0_i32_0 = arith.constant 0 : i32
    %c0_i32_1 = arith.constant 0 : i32
    return %c0_i32, %c0_i32_0 : i32, i32
  }
  func.func @transform_4(%arg0: i32) -> (i32, i32) {
    %c0_i32 = arith.constant 0 : i32
    %c0_i32_0 = arith.constant 0 : i32
    return %c0_i32, %arg0 : i32, i32
  }
}

</mosaic_0001>

<bundles_post_ra>
// kernel: net_forward.1
= control target key start
LH: loop header
LB: loop body
LE: loop exit
PB: predicated region body
PF: predicated region fallthrough
CT: control target
= control target key end

     0   :  { %vm130_vm0 = vcmask 64512   ;;  %v1232_v3 = vmov 0   ;;  %v1233_v35 = vmov 1   ;;  %s1596_s0 = inlined_call_operand.vmem [shape: f32[8,8], index: 0, kind: input, shape index: {}]   ;;  %s1597_s1 = inlined_call_operand.vmem [shape: f32[128,8], index: 1, kind: input, shape index: {}]   ;;  %s1598_s3 = inlined_call_operand.vmem [shape: f32[128,4], index: 3, kind: input, shape index: {}]   ;;  %s1599_s2 = inlined_call_operand.vmem [shape: f32[128,256], index: 2, kind: input, shape index: {}]   ;;  %s1600_s4 = inlined_call_operand.vmem [shape: f32[8,8], index: 4, kind: output, shape index: {}]  }
   0x1   :  { %v17_v0 = vld [vmem:[%s1596_s0] sm:$0xff]  ;;  %v19_v2 = vld [vmem:[%s1597_s1 + $0x8] sm:$0xff]  ;;  %1222 = vset.pattern.permute.xlu0 %v1232_v3  ;;  %1223 = vset.pattern.permute.xlu1 %v1232_v3  ;;  %v20_v4 = vld [vmem:[%s1597_s1 + $0x10] sm:$0xff] }
   0x2   :  { %v18_v1 = vld [vmem:[%s1597_s1] sm:$0xff]  ;;  %1081 = vmatprep.subr.mxu0 %v17_v0  ;;  %v21_v5 = vld [vmem:[%s1597_s1 + $0x18] sm:$0xff]  ;;  %v1290_v8 = vld [vmem:[%s1598_s3 + $0x68] sm:$0xff] }
   0x3   :  { %1083 = vmatprep.mubr.msk.f32.mxu0 %vm130_vm0, %v18_v1  ;;  %1082 = vmatpush3.msra.mxu0 %v17_v0  ;;  %v22_v6 = vld [vmem:[%s1597_s1 + $0x20] sm:$0xff]  ;;  %v1284_v7 = vld [vmem:[%s1598_s3 + $0x78] sm:$0xff]  ;;  %v1297_v9 = vld [vmem:[%s1598_s3 + $0x70] sm:$0xff] }
   0x4   :  { %1084 = vmatmul.mubr.msk.f32.vlgmr.msra.gmra.mxu0 %vm130_vm0, %v19_v2  ;;  %127 = vperm.xlu0 %1222, %v1284_v7   ;;  %v23_v10 = vld [vmem:[%s1597_s1 + $0x28] sm:$0xff]  ;;  %v1306_v11 = vld [vmem:[%s1598_s3 + $0x60] sm:$0xff]  ;;  %v24_v12 = vld [vmem:[%s1597_s1 + $0x30] sm:$0xff] }
   0x5   :  { %1086 = vmatprep.mubr.msk.f32.mxu0 %vm130_vm0, %v20_v4  ;;  %117 = vperm.xlu1 %1223, %v1290_v8   ;;  %v1317_v13 = vld [vmem:[%s1598_s3 + $0x58] sm:$0xff]  ;;  %v1326_v15 = vld [vmem:[%s1598_s3 + $0x50] sm:$0xff]  ;;  %v26_v16 = vld [vmem:[%s1597_s1 + $0x40] sm:$0xff] }
   0x6   :  { %v25_v14 = vld [vmem:[%s1597_s1 + $0x38] sm:$0xff]  ;;  %v1337_v17 = vld [vmem:[%s1598_s3 + $0x48] sm:$0xff]  ;;  %v1346_v19 = vld [vmem:[%s1598_s3 + $0x40] sm:$0xff] }
   0x7   :  { %v27_v18 = vld [vmem:[%s1597_s1 + $0x48] sm:$0xff]  ;;  %v28_v20 = vld [vmem:[%s1597_s1 + $0x50] sm:$0xff]  ;;  %v1357_v21 = vld [vmem:[%s1598_s3 + $0x38] sm:$0xff] }
   0x8   :  { %1087 = vmatmul.mubr.msk.f32.gmra.mxu0 %vm130_vm0, %v21_v5  ;;  %122 = vperm.xlu0 %1222, %v1297_v9   ;;  %v29_v22 = vld [vmem:[%s1597_s1 + $0x58] sm:$0xff]  ;;  %v1366_v23 = vld [vmem:[%s1598_s3 + $0x30] sm:$0xff]  ;;  %v30_v24 = vld [vmem:[%s1597_s1 + $0x60] sm:$0xff] }
   0x9   :  { %1089 = vmatprep.mubr.msk.f32.mxu0 %vm130_vm0, %v22_v6  ;;  %112 = vperm.xlu1 %1223, %v1306_v11   ;;  %v1377_v25 = vld [vmem:[%s1598_s3 + $0x28] sm:$0xff]  ;;  %v1386_v27 = vld [vmem:[%s1598_s3 + $0x20] sm:$0xff]  ;;  %v32_v28 = vld [vmem:[%s1597_s1 + $0x70] sm:$0xff] }
   0xa   :  { %v31_v26 = vld [vmem:[%s1597_s1 + $0x68] sm:$0xff]  ;;  %v1397_v29 = vld [vmem:[%s1598_s3 + $0x18] sm:$0xff]  ;;  %v1406_v31 = vld [vmem:[%s1598_s3 + $0x10] sm:$0xff] }
   0xb   :  { %v33_v30 = vld [vmem:[%s1597_s1 + $0x78] sm:$0xff]  ;;  %v1414_v32 = vld [vmem:[%s1598_s3 + $0x8] sm:$0xff]  ;;  %v1419_v33 = vld [vmem:[%s1598_s3] sm:$0xff] }
   0xc   :  { %1090 = vmatmul.mubr.msk.f32.gmra.mxu0 %vm130_vm0, %v23_v10  ;;  %107 = vperm.xlu0 %1222, %v1317_v13   ;;  %v340_v34 = vld [vmem:[%s1599_s2] sm:$0xff] }
   0xd   :  { %1092 = vmatprep.mubr.msk.f32.mxu0 %vm130_vm0, %v24_v12  ;;  %102 = vperm.xlu1 %1223, %v1326_v15  }
   0xe   :  { %1139 = vmatprep.mubr.f32.mxu1 %v340_v34 }
  0x10   :  { %1093 = vmatmul.mubr.msk.f32.gmra.mxu0 %vm130_vm0, %v25_v14  ;;  %97 = vperm.xlu0 %1222, %v1337_v17  }
  0x11   :  { %1095 = vmatprep.mubr.msk.f32.mxu0 %vm130_vm0, %v26_v16  ;;  %92 = vperm.xlu1 %1223, %v1346_v19  }
  0x14   :  { %1096 = vmatmul.mubr.msk.f32.gmra.mxu0 %vm130_vm0, %v27_v18  ;;  %87 = vperm.xlu0 %1222, %v1357_v21  }
  0x15   :  { %1098 = vmatprep.mubr.msk.f32.mxu0 %vm130_vm0, %v28_v20  ;;  %82 = vperm.xlu1 %1223, %v1366_v23  }
  0x18   :  { %1099 = vmatmul.mubr.msk.f32.gmra.mxu0 %vm130_vm0, %v29_v22  ;;  %77 = vperm.xlu0 %1222, %v1377_v25  }
  0x19   :  { %1101 = vmatprep.mubr.msk.f32.mxu0 %vm130_vm0, %v30_v24  ;;  %72 = vperm.xlu1 %1223, %v1386_v27  }
  0x1c   :  { %1102 = vmatmul.mubr.msk.f32.gmra.mxu0 %vm130_vm0, %v31_v26  ;;  %67 = vperm.xlu0 %1222, %v1397_v29  }
  0x1d   :  { %1104 = vmatprep.mubr.msk.f32.mxu0 %vm130_vm0, %v32_v28  ;;  %62 = vperm.xlu1 %1223, %v1406_v31  }
  0x20   :  { %1105 = vmatmul.mubr.msk.f32.gmra.mxu0 %vm130_vm0, %v33_v30  ;;  %57 = vperm.xlu0 %1222, %v1414_v32  }
  0x21   :  { %52 = vperm.xlu1 %1223, %v1419_v33  }
  0x24   :  { %1224 = vset.pattern.permute.xlu0 %v1233_v35 }
  0x25   :  { %1225 = vset.pattern.permute.xlu1 %v1233_v35  ;;  %417 = vperm.xlu0 %1224, %v1284_v7  }
  0x26   :  { %413 = vperm.xlu1 %1225, %v1297_v9  }
  0x29   :  { %405 = vperm.xlu0 %1224, %v1306_v11  }
  0x2a   :  { %409 = vperm.xlu1 %1225, %v1290_v8  }
  0x2d   :  { %397 = vperm.xlu0 %1224, %v1326_v15  }
  0x2e   :  { %401 = vperm.xlu1 %1225, %v1317_v13  }
  0x31   :  { %389 = vperm.xlu0 %1224, %v1346_v19  }
  0x32   :  { %393 = vperm.xlu1 %1225, %v1337_v17  }
  0x35   :  { %381 = vperm.xlu0 %1224, %v1366_v23  }
  0x36   :  { %385 = vperm.xlu1 %1225, %v1357_v21  }
  0x39   :  { %373 = vperm.xlu0 %1224, %v1386_v27  }
  0x3a   :  { %377 = vperm.xlu1 %1225, %v1377_v25  }
  0x3d   :  { %365 = vperm.xlu0 %1224, %v1406_v31  }
  0x3e   :  { %369 = vperm.xlu1 %1225, %v1397_v29  }
  0x41   :  { %357 = vperm.xlu0 %1224, %v1419_v33  }
  0x42   :  { %361 = vperm.xlu1 %1225, %v1414_v32  }
  0x7f   :  { %v128_v41 = vpop.permute.xlu0 %127 }
  0x80   :  { %v118_v43 = vpop.permute.xlu1 %117 }
  0x83   :  { %v123_v46 = vpop.permute.xlu0 %122 }
  0x84   :  { %v113_v48 = vpop.permute.xlu1 %112 }
  0x87   :  { %v108_v51 = vpop.permute.xlu0 %107 }
  0x88   :  { %v103_v53 = vpop.permute.xlu1 %102 }
  0x8b   :  { %v98_v56 = vpop.permute.xlu0 %97 }
  0x8c   :  { %v93_v59 = vpop.permute.xlu1 %92 }
  0x8f   :  { %v88_v2 = vpop.permute.xlu0 %87 }
  0x90   :  { %v83_v5 = vpop.permute.xlu1 %82 }
  0x93   :  { %v78_v16 = vpop.permute.xlu0 %77 }
  0x94   :  { %v73_v22 = vpop.permute.xlu1 %72 }
  0x97   :  { %v68_v34 = vpop.permute.xlu0 %67 }
  0xc4   :  { %v1442_v36 = vpop.f32.mrf.mxu0 }
  0xc6   :  { %v1444_v37 = vpop.f32.mrf.mxu0 }
  0xc8   :  { %v1446_v38 = vpop.f32.mrf.mxu0 }
  0xca   :  { %v1448_v39 = vpop.f32.mrf.mxu0 }
  0xcc   :  { %v1091_v40 = vpop.f32.mrf.mxu0 }
  0xcd   :  { %v271_v35 = vadd.f32 %v1091_v40, %v78_v16 }
  0xce   :  { %v265_v42 = vpop.f32.mrf.mxu0 }
  0xd0   :  { %v1094_v44 = vpop.f32.mrf.mxu0 }
  0xd1   :  { %v281_v24 = vadd.f32 %v1094_v44, %v88_v2  ;;  %v329_v44 = vmax.f32 %v271_v35, 0.0  ;;  %v355_v2 = vld [vmem:[%s1599_s2 + $0xf0] sm:$0xff] }
  0xd2   :  { %v275_v45 = vpop.f32.mrf.mxu0 }
  0xd3   :  { %v276_v28 = vadd.f32 %v275_v45, %v83_v5 }
  0xd4   :  { %v1097_v47 = vpop.f32.mrf.mxu0 }
  0xd5   :  { %v291_v12 = vadd.f32 %v1097_v47, %v98_v56  ;;  %v330_v47 = vmax.f32 %v276_v28, 0.0  ;;  %v345_v56 = vld [vmem:[%s1599_s2 + $0x50] sm:$0xff] }
  0xd6   :  { %v285_v49 = vpop.f32.mrf.mxu0 }
  0xd7   :  { %v286_v18 = vadd.f32 %v285_v49, %v93_v59  ;;  %v333_v26 = vmax.f32 %v291_v12, 0.0  ;;  %v58_v49 = vpop.permute.xlu0 %57  ;;  %v348_v59 = vld [vmem:[%s1599_s2 + $0x80] sm:$0xff] }
  0xd8   :  { %v1100_v50 = vpop.f32.mrf.mxu0  ;;  %v251_v40 = vadd.f32 %v1442_v36, %v58_v49  ;;  %v342_v36 = vld [vmem:[%s1599_s2 + $0x20] sm:$0xff] }
  0xd9   :  { %v301_v3 = vadd.f32 %v1100_v50, %v108_v51  ;;  %v332_v30 = vmax.f32 %v286_v18, 0.0 }
  0xda   :  { %v295_v52 = vpop.f32.mrf.mxu0 }
  0xdb   :  { %v296_v6 = vadd.f32 %v295_v52, %v103_v53  ;;  %v335_v14 = vmax.f32 %v301_v3, 0.0  ;;  %v581_v3 = vld [vmem:[%s1599_s2 + $0x8] sm:$0xff] }
  0xdc   :  { %v1103_v54 = vpop.f32.mrf.mxu0  ;;  %1195 = vmatprep.mubr.f32.mxu0 %v581_v3 }
  0xdd   :  { %v311_v61 = vadd.f32 %v1103_v54, %v118_v43  ;;  %v334_v20 = vmax.f32 %v296_v6, 0.0  ;;  %v63_v43 = vpop.permute.xlu1 %62 }
  0xde   :  { %v305_v55 = vpop.f32.mrf.mxu0  ;;  %v256_v45 = vadd.f32 %v1448_v39, %v63_v43  ;;  %v341_v39 = vld [vmem:[%s1599_s2 + $0x10] sm:$0xff] }
  0xdf   :  { %v306_v0 = vadd.f32 %v305_v55, %v113_v48  ;;  %v337_v4 = vmax.f32 %v311_v61, 0.0  ;;  %v261_v48 = vadd.f32 %v1446_v38, %v68_v34  ;;  %v325_v38 = vmax.f32 %v251_v40, 0.0  ;;  %v344_v55 = vld [vmem:[%s1599_s2 + $0x40] sm:$0xff] }
  0xe0   :  { %v1106_v57 = vpop.f32.mrf.mxu0  ;;  %v326_v53 = vmax.f32 %v256_v45, 0.0  ;;  %v350_v61 = vld [vmem:[%s1599_s2 + $0xa0] sm:$0xff] }
  0xe1   :  { %v321_v58 = vadd.f32 %v1106_v57, %v128_v41  ;;  %v336_v10 = vmax.f32 %v306_v0, 0.0  ;;  %v331_v41 = vmax.f32 %v281_v24, 0.0  ;;  %v53_v51 = vpop.permute.xlu1 %52  ;;  %v327_v52 = vmax.f32 %v261_v48, 0.0  ;;  %v346_v57 = vld [vmem:[%s1599_s2 + $0x60] sm:$0xff]  ;;  %v353_v0 = vld [vmem:[%s1599_s2 + $0xd0] sm:$0xff] }
  0xe2   :  { %v315_v60 = vpop.f32.mrf.mxu0 }
  0xe3   :  { %v339_v62 = vmax.f32 %v321_v58, 0.0  ;;  %v316_v63 = vadd.f32 %v315_v60, %v123_v46  ;;  %v266_v46 = vadd.f32 %v265_v42, %v73_v22  ;;  %v246_v42 = vadd.f32 %v1444_v37, %v53_v51  ;;  %v343_v37 = vld [vmem:[%s1599_s2 + $0x30] sm:$0xff] }
  0xe4   :  { %v347_v58 = vld [vmem:[%s1599_s2 + $0x70] sm:$0xff] }
  0xe5   :  { %v338_v1 = vmax.f32 %v316_v63, 0.0  ;;  %1107 = vmatprep.subr.mxu1 %v339_v62  ;;  %v328_v50 = vmax.f32 %v266_v46, 0.0  ;;  %v324_v54 = vmax.f32 %v246_v42, 0.0  ;;  %v349_v60 = vld [vmem:[%s1599_s2 + $0x90] sm:$0xff]  ;;  %v352_v63 = vld [vmem:[%s1599_s2 + $0xc0] sm:$0xff] }
  0xe6   :  { %1108 = vmatpush3.msra.mxu1 %v339_v62  ;;  %v351_v62 = vld [vmem:[%s1599_s2 + $0xb0] sm:$0xff] }
  0xe7   :  { %1109 = vmatprep.subr.mxu1 %v338_v1 }
  0xe8   :  { %1110 = vmatpush3.msra.mxu1 %v338_v1  ;;  %v354_v1 = vld [vmem:[%s1599_s2 + $0xe0] sm:$0xff] }
  0xe9   :  { %1111 = vmatprep.subr.mxu1 %v337_v4 }
  0xea   :  { %1112 = vmatpush3.msra.mxu1 %v337_v4  ;;  %v1234_v4 = vmov 2  }
  0xeb   :  { %1113 = vmatprep.subr.mxu1 %v336_v10  ;;  %1226 = vset.pattern.permute.xlu1 %v1234_v4 }
  0xec   :  { %1114 = vmatpush3.msra.mxu1 %v336_v10  ;;  %1227 = vset.pattern.permute.xlu0 %v1234_v4 }
  0xed   :  { %1115 = vmatprep.subr.mxu1 %v335_v14  ;;  %598 = vperm.xlu1 %1226, %v1419_v33  }
  0xee   :  { %1116 = vmatpush3.msra.mxu1 %v335_v14  ;;  %602 = vperm.xlu0 %1227, %v1414_v32  }
  0xef   :  { %1117 = vmatprep.subr.mxu1 %v334_v20 }
  0xf0   :  { %1118 = vmatpush3.msra.mxu1 %v334_v20 }
  0xf1   :  { %1119 = vmatprep.subr.mxu1 %v333_v26  ;;  %606 = vperm.xlu1 %1226, %v1406_v31  }
  0xf2   :  { %1120 = vmatpush3.msra.mxu1 %v333_v26  ;;  %614 = vperm.xlu0 %1227, %v1386_v27  }
  0xf3   :  { %1121 = vmatprep.subr.mxu1 %v332_v30 }
  0xf4   :  { %1122 = vmatpush3.msra.mxu1 %v332_v30 }
  0xf5   :  { %1123 = vmatprep.subr.mxu1 %v331_v41  ;;  %610 = vperm.xlu1 %1226, %v1397_v29  }
  0xf6   :  { %1124 = vmatpush3.msra.mxu1 %v331_v41  ;;  %622 = vperm.xlu0 %1227, %v1366_v23  }
  0xf7   :  { %1125 = vmatprep.subr.mxu1 %v330_v47 }
  0xf8   :  { %1126 = vmatpush3.msra.mxu1 %v330_v47 }
  0xf9   :  { %1127 = vmatprep.subr.mxu1 %v329_v44  ;;  %618 = vperm.xlu1 %1226, %v1377_v25  }
  0xfa   :  { %1128 = vmatpush3.msra.mxu1 %v329_v44  ;;  %630 = vperm.xlu0 %1227, %v1346_v19  }
  0xfb   :  { %1129 = vmatprep.subr.mxu1 %v328_v50 }
  0xfc   :  { %1130 = vmatpush3.msra.mxu1 %v328_v50 }
  0xfd   :  { %1131 = vmatprep.subr.mxu1 %v327_v52  ;;  %626 = vperm.xlu1 %1226, %v1357_v21  }
  0xfe   :  { %1132 = vmatpush3.msra.mxu1 %v327_v52  ;;  %638 = vperm.xlu0 %1227, %v1326_v15  }
  0xff   :  { %1133 = vmatprep.subr.mxu1 %v326_v53 }
 0x100   :  { %1134 = vmatpush3.msra.mxu1 %v326_v53 }
 0x101   :  { %1135 = vmatprep.subr.mxu1 %v325_v38  ;;  %634 = vperm.xlu1 %1226, %v1337_v17   ;;  %v414_v17 = vpop.permute.xlu1 %413 }
 0x102   :  { %1136 = vmatpush3.msra.mxu1 %v325_v38  ;;  %646 = vperm.xlu0 %1227, %v1306_v11   ;;  %v418_v11 = vpop.permute.xlu0 %417 }
 0x103   :  { %1137 = vmatprep.subr.mxu1 %v324_v54 }
 0x104   :  { %1138 = vmatpush3.msra.mxu1 %v324_v54 }
 0x105   :  { %1140 = vmatmul.mubr.f32.vlgmr.msra.gmra.mxu1 %v341_v39  ;;  %642 = vperm.xlu1 %1226, %v1317_v13   ;;  %v410_v31 = vpop.permute.xlu1 %409 }
 0x106   :  { %1142 = vmatprep.mubr.f32.mxu1 %v342_v36  ;;  %654 = vperm.xlu0 %1227, %v1297_v9   ;;  %v406_v32 = vpop.permute.xlu0 %405 }
 0x109   :  { %1143 = vmatmul.mubr.f32.gmra.mxu1 %v343_v37  ;;  %650 = vperm.xlu1 %1226, %v1290_v8  }
 0x10a   :  { %1145 = vmatprep.mubr.f32.mxu1 %v344_v55  ;;  %v398_v6 = vpop.permute.xlu0 %397 }
 0x10d   :  { %1146 = vmatmul.mubr.f32.gmra.mxu1 %v345_v56  ;;  %658 = vperm.xlu1 %1226, %v1284_v7   ;;  %v402_v7 = vpop.permute.xlu1 %401 }
 0x10e   :  { %1148 = vmatprep.mubr.f32.mxu1 %v346_v57  ;;  %v390_v20 = vpop.permute.xlu0 %389 }
 0x111   :  { %1149 = vmatmul.mubr.f32.gmra.mxu1 %v347_v58  ;;  %v394_v14 = vpop.permute.xlu1 %393 }
 0x112   :  { %1151 = vmatprep.mubr.f32.mxu1 %v348_v59  ;;  %v382_v46 = vpop.permute.xlu0 %381 }
 0x115   :  { %1152 = vmatmul.mubr.f32.gmra.mxu1 %v349_v60  ;;  %v386_v35 = vpop.permute.xlu1 %385 }
 0x116   :  { %1154 = vmatprep.mubr.f32.mxu1 %v350_v61  ;;  %v374_v40 = vpop.permute.xlu0 %373 }
 0x119   :  { %1155 = vmatmul.mubr.f32.gmra.mxu1 %v351_v62  ;;  %v378_v45 = vpop.permute.xlu1 %377 }
 0x11a   :  { %1157 = vmatprep.mubr.f32.mxu1 %v352_v63  ;;  %v366_v37 = vpop.permute.xlu0 %365 }
 0x11d   :  { %1158 = vmatmul.mubr.f32.gmra.mxu1 %v353_v0  ;;  %v370_v54 = vpop.permute.xlu1 %369 }
 0x11e   :  { %1160 = vmatprep.mubr.f32.mxu1 %v354_v1  ;;  %v358_v62 = vpop.permute.xlu0 %357 }
 0x121   :  { %1161 = vmatmul.mubr.f32.gmra.mxu1 %v355_v2  ;;  %v362_v59 = vpop.permute.xlu1 %361 }
 0x1c5   :  { %v1518_v23 = vpop.f32.mrf.mxu1 }
 0x1c6   :  { %v492_v63 = vadd.f32 %v1518_v23, %v362_v59  ;;  %v583_v23 = vld [vmem:[%s1599_s2 + $0x28] sm:$0xff] }
 0x1c7   :  { %v1520_v25 = vpop.f32.mrf.mxu1 }
 0x1c8   :  { %v487_v1 = vadd.f32 %v1520_v25, %v358_v62  ;;  %v566_v3 = vmax.f32 %v492_v63, 0.0  ;;  %v584_v25 = vld [vmem:[%s1599_s2 + $0x38] sm:$0xff] }
 0x1c9   :  { %v1522_v19 = vpop.f32.mrf.mxu1 }
 0x1ca   :  { %v502_v57 = vadd.f32 %v1522_v19, %v370_v54  ;;  %v565_v4 = vmax.f32 %v487_v1, 0.0  ;;  %v582_v19 = vld [vmem:[%s1599_s2 + $0x18] sm:$0xff] }
 0x1cb   :  { %v1524_v21 = vpop.f32.mrf.mxu1 }
 0x1cc   :  { %v497_v60 = vadd.f32 %v1524_v21, %v366_v37  ;;  %v568_v0 = vmax.f32 %v502_v57, 0.0  ;;  %v585_v21 = vld [vmem:[%s1599_s2 + $0x48] sm:$0xff] }
 0x1cd   :  { %v1147_v15 = vpop.f32.mrf.mxu1 }
 0x1ce   :  { %v512_v39 = vadd.f32 %v1147_v15, %v378_v45  ;;  %v567_v2 = vmax.f32 %v497_v60, 0.0  ;;  %v586_v15 = vld [vmem:[%s1599_s2 + $0x58] sm:$0xff] }
 0x1cf   :  { %v506_v27 = vpop.f32.mrf.mxu1 }
 0x1d0   :  { %v507_v55 = vadd.f32 %v506_v27, %v374_v40  ;;  %v570_v58 = vmax.f32 %v512_v39, 0.0  ;;  %v588_v27 = vld [vmem:[%s1599_s2 + $0x78] sm:$0xff] }
 0x1d1   :  { %v1150_v29 = vpop.f32.mrf.mxu1 }
 0x1d2   :  { %v522_v52 = vadd.f32 %v1150_v29, %v386_v35  ;;  %v569_v61 = vmax.f32 %v507_v55, 0.0  ;;  %v590_v29 = vld [vmem:[%s1599_s2 + $0x98] sm:$0xff] }
 0x1d3   :  { %v516_v13 = vpop.f32.mrf.mxu1 }
 0x1d4   :  { %v517_v53 = vadd.f32 %v516_v13, %v382_v46  ;;  %v572_v36 = vmax.f32 %v522_v52, 0.0  ;;  %v591_v13 = vld [vmem:[%s1599_s2 + $0xa8] sm:$0xff] }
 0x1d5   :  { %v1153_v9 = vpop.f32.mrf.mxu1 }
 0x1d6   :  { %v532_v44 = vadd.f32 %v1153_v9, %v394_v14  ;;  %v571_v56 = vmax.f32 %v517_v53, 0.0  ;;  %v593_v9 = vld [vmem:[%s1599_s2 + $0xc8] sm:$0xff] }
 0x1d7   :  { %v526_v8 = vpop.f32.mrf.mxu1 }
 0x1d8   :  { %v527_v50 = vadd.f32 %v526_v8, %v390_v20  ;;  %v574_v42 = vmax.f32 %v532_v44, 0.0  ;;  %v595_v8 = vld [vmem:[%s1599_s2 + $0xe8] sm:$0xff] }
 0x1d9   :  { %v1156_v33 = vpop.f32.mrf.mxu1 }
 0x1da   :  { %v542_v41 = vadd.f32 %v1156_v33, %v402_v7  ;;  %v573_v38 = vmax.f32 %v527_v50, 0.0  ;;  %v596_v33 = vld [vmem:[%s1599_s2 + $0xf8] sm:$0xff]  ;;  %v599_v7 = vpop.permute.xlu1 %598 }
 0x1db   :  { %v536_v5 = vpop.f32.mrf.mxu1 }
 0x1dc   :  { %v537_v47 = vadd.f32 %v536_v5, %v398_v6  ;;  %v576_v49 = vmax.f32 %v542_v41, 0.0 }
 0x1dd   :  { %v1159_v10 = vpop.f32.mrf.mxu1 }
 0x1de   :  { %v552_v24 = vadd.f32 %v1159_v10, %v410_v31  ;;  %v575_v51 = vmax.f32 %v537_v47, 0.0  ;;  %v592_v31 = vld [vmem:[%s1599_s2 + $0xb8] sm:$0xff]  ;;  %v607_v5 = vpop.permute.xlu1 %606  ;;  %v603_v10 = vpop.permute.xlu0 %602 }
 0x1df   :  { %v546_v12 = vpop.f32.mrf.mxu1 }
 0x1e0   :  { %v547_v30 = vadd.f32 %v546_v12, %v406_v32  ;;  %v578_v43 = vmax.f32 %v552_v24, 0.0  ;;  %v594_v32 = vld [vmem:[%s1599_s2 + $0xd8] sm:$0xff] }
 0x1e1   :  { %v1162_v16 = vpop.f32.mrf.mxu1 }
 0x1e2   :  { %v562_v18 = vadd.f32 %v1162_v16, %v418_v11  ;;  %v577_v48 = vmax.f32 %v547_v30, 0.0  ;;  %v589_v11 = vld [vmem:[%s1599_s2 + $0x88] sm:$0xff]  ;;  %v611_v6 = vpop.permute.xlu1 %610  ;;  %v615_v14 = vpop.permute.xlu0 %614 }
 0x1e3   :  { %v556_v22 = vpop.f32.mrf.mxu1 }
 0x1e4   :  { %v580_v26 = vmax.f32 %v562_v18, 0.0  ;;  %v557_v28 = vadd.f32 %v556_v22, %v414_v17  ;;  %v587_v17 = vld [vmem:[%s1599_s2 + $0x68] sm:$0xff] }
 0x1e6   :  { %v579_v34 = vmax.f32 %v557_v28, 0.0  ;;  %1163 = vmatprep.subr.mxu0 %v580_v26  ;;  %v619_v12 = vpop.permute.xlu1 %618  ;;  %v623_v24 = vpop.permute.xlu0 %622 }
 0x1e7   :  { %1164 = vmatpush3.msra.mxu0 %v580_v26 }
 0x1e8   :  { %1165 = vmatprep.subr.mxu0 %v579_v34 }
 0x1e9   :  { %1166 = vmatpush3.msra.mxu0 %v579_v34 }
 0x1ea   :  { %1167 = vmatprep.subr.mxu0 %v578_v43  ;;  %v627_v20 = vpop.permute.xlu1 %626  ;;  %v631_v35 = vpop.permute.xlu0 %630 }
 0x1eb   :  { %1168 = vmatpush3.msra.mxu0 %v578_v43 }
 0x1ec   :  { %1169 = vmatprep.subr.mxu0 %v577_v48 }
 0x1ed   :  { %1170 = vmatpush3.msra.mxu0 %v577_v48 }
 0x1ee   :  { %1171 = vmatprep.subr.mxu0 %v576_v49  ;;  %v635_v30 = vpop.permute.xlu1 %634  ;;  %v639_v48 = vpop.permute.xlu0 %638 }
 0x1ef   :  { %1172 = vmatpush3.msra.mxu0 %v576_v49 }
 0x1f0   :  { %1173 = vmatprep.subr.mxu0 %v575_v51 }
 0x1f1   :  { %1174 = vmatpush3.msra.mxu0 %v575_v51 }
 0x1f2   :  { %1175 = vmatprep.subr.mxu0 %v574_v42  ;;  %v643_v46 = vpop.permute.xlu1 %642  ;;  %v647_v39 = vpop.permute.xlu0 %646 }
 0x1f3   :  { %1176 = vmatpush3.msra.mxu0 %v574_v42 }
 0x1f4   :  { %1177 = vmatprep.subr.mxu0 %v573_v38 }
 0x1f5   :  { %1178 = vmatpush3.msra.mxu0 %v573_v38 }
 0x1f6   :  { %1179 = vmatprep.subr.mxu0 %v572_v36  ;;  %v651_v50 = vpop.permute.xlu1 %650 }
 0x1f7   :  { %1180 = vmatpush3.msra.mxu0 %v572_v36 }
 0x1f8   :  { %1181 = vmatprep.subr.mxu0 %v571_v56 }
 0x1f9   :  { %1182 = vmatpush3.msra.mxu0 %v571_v56 }
 0x1fa   :  { %1183 = vmatprep.subr.mxu0 %v570_v58 }
 0x1fb   :  { %1184 = vmatpush3.msra.mxu0 %v570_v58 }
 0x1fc   :  { %1185 = vmatprep.subr.mxu0 %v569_v61 }
 0x1fd   :  { %1186 = vmatpush3.msra.mxu0 %v569_v61 }
 0x1fe   :  { %1187 = vmatprep.subr.mxu0 %v568_v0 }
 0x1ff   :  { %1188 = vmatpush3.msra.mxu0 %v568_v0 }
 0x200   :  { %1189 = vmatprep.subr.mxu0 %v567_v2 }
 0x201   :  { %1190 = vmatpush3.msra.mxu0 %v567_v2 }
 0x202   :  { %1191 = vmatprep.subr.mxu0 %v566_v3 }
 0x203   :  { %1192 = vmatpush3.msra.mxu0 %v566_v3 }
 0x204   :  { %1193 = vmatprep.subr.mxu0 %v565_v4 }
 0x205   :  { %1194 = vmatpush3.msra.mxu0 %v565_v4 }
 0x206   :  { %1196 = vmatmul.mubr.f32.vlgmr.msra.gmra.mxu0 %v582_v19  ;;  %v659_v19 = vpop.permute.xlu1 %658 }
 0x207   :  { %1198 = vmatprep.mubr.f32.mxu0 %v583_v23 }
 0x20a   :  { %1199 = vmatmul.mubr.f32.gmra.mxu0 %v584_v25 }
 0x20b   :  { %1201 = vmatprep.mubr.f32.mxu0 %v585_v21 }
 0x20e   :  { %1202 = vmatmul.mubr.f32.gmra.mxu0 %v586_v15 }
 0x20f   :  { %1204 = vmatprep.mubr.f32.mxu0 %v587_v17 }
 0x212   :  { %1205 = vmatmul.mubr.f32.gmra.mxu0 %v588_v27 }
 0x213   :  { %1207 = vmatprep.mubr.f32.mxu0 %v589_v11 }
 0x216   :  { %1208 = vmatmul.mubr.f32.gmra.mxu0 %v590_v29 }
 0x217   :  { %1210 = vmatprep.mubr.f32.mxu0 %v591_v13 }
 0x21a   :  { %1211 = vmatmul.mubr.f32.gmra.mxu0 %v592_v31  ;;  %v655_v31 = vpop.permute.xlu0 %654 }
 0x21b   :  { %1213 = vmatprep.mubr.f32.mxu0 %v593_v9 }
 0x21e   :  { %1214 = vmatmul.mubr.f32.gmra.mxu0 %v594_v32 }
 0x21f   :  { %1216 = vmatprep.mubr.f32.mxu0 %v595_v8 }
 0x222   :  { %1217 = vmatmul.mubr.f32.gmra.mxu0 %v596_v33 }
 0x2c6   :  { %v1197_v16 = vpop.f32.mrf.mxu0 }
 0x2c7   :  { %v733_v51 = vadd.f32 %v1197_v16, %v603_v10 }
 0x2c8   :  { %v727_v18 = vpop.f32.mrf.mxu0 }
 0x2c9   :  { %v728_v40 = vadd.f32 %v727_v18, %v599_v7  ;;  %v807_v60 = vsel %vm130_vm0, %v733_v51, -inf }
 0x2ca   :  { %v1200_v22 = vpop.f32.mrf.mxu0 }
 0x2cb   :  { %v743_v36 = vadd.f32 %v1200_v22, %v611_v6  ;;  %v806_v61 = vsel %vm130_vm0, %v728_v40, -inf }
 0x2cc   :  { %v737_v26 = vpop.f32.mrf.mxu0 }
 0x2cd   :  { %v738_v37 = vadd.f32 %v737_v26, %v607_v5  ;;  %v809_v23 = vsel %vm130_vm0, %v743_v36, -inf }
 0x2ce   :  { %v1203_v28 = vpop.f32.mrf.mxu0 }
 0x2cf   :  { %v753_v52 = vadd.f32 %v1203_v28, %v619_v12  ;;  %v808_v25 = vsel %vm130_vm0, %v738_v37, -inf }
 0x2d0   :  { %v747_v34 = vpop.f32.mrf.mxu0 }
 0x2d1   :  { %v748_v45 = vadd.f32 %v747_v34, %v615_v14  ;;  %v812_v62 = vsel %vm130_vm0, %v753_v52, -inf }
 0x2d2   :  { %v1206_v41 = vpop.f32.mrf.mxu0  ;;  %v813_v9 = vmax.f32 %v807_v60, %v812_v62 }
 0x2d3   :  { %v763_v42 = vadd.f32 %v1206_v41, %v627_v20  ;;  %v810_v57 = vsel %vm130_vm0, %v748_v45, -inf  ;;  %v891_v45 = vlaneseq }
 0x2d4   :  { %v757_v43 = vpop.f32.mrf.mxu0  ;;  %v811_v21 = vmax.f32 %v806_v61, %v810_v57 }
 0x2d5   :  { %v758_v38 = vadd.f32 %v757_v43, %v623_v24  ;;  %v816_v63 = vsel %vm130_vm0, %v763_v42, -inf }
 0x2d6   :  { %v1209_v47 = vpop.f32.mrf.mxu0  ;;  %v817_v32 = vmax.f32 %v809_v23, %v816_v63 }
 0x2d7   :  { %v773_v55 = vadd.f32 %v1209_v47, %v635_v30  ;;  %v814_v1 = vsel %vm130_vm0, %v758_v38, -inf }
 0x2d8   :  { %v767_v44 = vpop.f32.mrf.mxu0  ;;  %v815_v8 = vmax.f32 %v808_v25, %v814_v1 }
 0x2d9   :  { %v768_v54 = vadd.f32 %v767_v44, %v631_v35  ;;  %v820_v15 = vsel %vm130_vm0, %v773_v55, -inf }
 0x2da   :  { %v1212_v49 = vpop.f32.mrf.mxu0  ;;  %v821_v12 = vmax.f32 %v813_v9, %v820_v15 }
 0x2db   :  { %v783_v58 = vadd.f32 %v1212_v49, %v643_v46  ;;  %v818_v2 = vsel %vm130_vm0, %v768_v54, -inf }
 0x2dc   :  { %v777_v53 = vpop.f32.mrf.mxu0  ;;  %v819_v33 = vmax.f32 %v811_v21, %v818_v2 }
 0x2dd   :  { %v778_v59 = vadd.f32 %v777_v53, %v639_v48  ;;  %v824_v27 = vsel %vm130_vm0, %v783_v58, -inf }
 0x2de   :  { %v1215_v56 = vpop.f32.mrf.mxu0  ;;  %v825_v14 = vmax.f32 %v817_v32, %v824_v27 }
 0x2df   :  { %v793_v3 = vadd.f32 %v1215_v56, %v651_v50  ;;  %v822_v11 = vsel %vm130_vm0, %v778_v59, -inf  ;;  %v892_v50 = vshrl.u32 %v891_v45, 7 }
 0x2e0   :  { %v787_v0 = vpop.f32.mrf.mxu0  ;;  %v823_v16 = vmax.f32 %v815_v8, %v822_v11 }
 0x2e1   :  { %v788_v4 = vadd.f32 %v787_v0, %v647_v39  ;;  %v828_v5 = vsel %vm130_vm0, %v793_v3, -inf  ;;  %vm908_vm1 = vcmp.lt.s32.totalorder %v892_v50, 3 }
 0x2e2   :  { %v1218_v17 = vpop.f32.mrf.mxu0  ;;  %v829_v22 = vmax.f32 %v821_v12, %v828_v5 }
 0x2e3   :  { %v826_v29 = vsel %vm130_vm0, %v788_v4, -inf  ;;  %v803_v13 = vadd.f32 %v1218_v17, %v659_v19 }
 0x2e4   :  { %v797_v7 = vpop.f32.mrf.mxu0  ;;  %v827_v18 = vmax.f32 %v819_v33, %v826_v29 }
 0x2e5   :  { %v832_v6 = vsel %vm130_vm0, %v803_v13, -inf  ;;  %v798_v10 = vadd.f32 %v797_v7, %v655_v31 }
 0x2e6   :  { %v833_v24 = vmax.f32 %v825_v14, %v832_v6  ;;  %v834_v28 = vmax.f32 %v827_v18, %v829_v22 }
 0x2e7   :  { %v830_v20 = vsel %vm130_vm0, %v798_v10, -inf }
 0x2e8   :  { %v831_v26 = vmax.f32 %v823_v16, %v830_v20 }
 0x2ea   :  { %v835_v30 = vmax.f32 %v831_v26, %v833_v24 }
 0x2ec   :  { %v836_v34 = vmax.f32 %v834_v28, %v835_v30 }
 0x2ee   :  { %v837_v35 = vrot.slane %v836_v34, 4 }
 0x2f0   :  { %v838_v41 = vmax.f32 %v836_v34, %v837_v35 }
 0x2f2   :  { %v839_v43 = vrot.slane %v838_v41, 2 }
 0x2f4   :  { %v840_v46 = vmax.f32 %v838_v41, %v839_v43 }
 0x2f6   :  { %v841_v47 = vrot.slane %v840_v46, 1 }
 0x2f8   :  { %v842_v48 = vmax.f32 %v840_v46, %v841_v47 }
 0x2fa   :  { %v843_v44 = vsub.f32 %v728_v40, %v842_v48 }
 0x2fc   :  { %v859_v49 = vmul.f32 1.442695, %v843_v44 }
 0x2fe   :  { %1228 = vpow2.f32 %v859_v49 }
 0x30b   :  { %v1229_v51 = vpop.eup %1228 }
 0x30c   :  { %v924_v52 = vsel %vm908_vm1, %v1229_v51, 0.0 }
 0x30d   :  { %v940_v42 = vsel %vm130_vm0, %v924_v52, 0.0 }
 0x30e   :  { %v971_v53 = vrot.slane %v940_v42, 4 }
 0x310   :  { %v972_v38 = vadd.f32 %v971_v53, %v940_v42 }
 0x312   :  { %v973_v54 = vrot.slane %v972_v38, 2 }
 0x314   :  { %v974_v39 = vadd.f32 %v973_v54, %v972_v38 }
 0x316   :  { %v975_v36 = vrot.slane %v974_v39, 1 }
 0x318   :  { %v976_v37 = vadd.f32 %v975_v36, %v974_v39 }
 0x31a   :  { %1230 = vrcp.f32 %v976_v37 }
 0x327   :  { %v1231_v55 = vpop.eup %1230 }
 0x328   :  { %v978_v56 = vmul.f32 %v1231_v55, %v924_v52 }
 0x32a   :  { %979 = vst.msk [vmem:[%s1600_s4] sm:$0xff] %vm130_vm0, %v978_v56 }

</bundles_post_ra>
